<compile_context>
chip_gen: v5e
topology: v5e:2x2
jax: 0.10.0
libtpu: 0.0.40
codegen_flags: <defaults>
</compile_context>

<pallas_src>
import jax
import jax.numpy as jnp
from jax.experimental import pallas as pl
from jax.experimental.pallas import tpu as pltpu

EPS = 1e-5
VMEM_LIMIT_BYTES = 32 * 1024 * 1024  # safe scoped limit on v5e / v6e / v7x


def _pick_tile_hw(hw: int, cin: int, cout: int, budget_bytes: int = 8 * 1024 * 1024) -> int:
    """Largest multiple-of-128 divisor of hw whose double-buffered tiles fit the VMEM budget."""
    if hw % 128 != 0:
        return hw  # small / odd spatial extent: full row (block == full dim is legal)
    # Per-pixel-column bytes, double-buffered: bf16 x in + f32 y out (phase 1),
    # f32 y in + f32 out (phase 2).
    per_col = 2 * (cin * 2 + 3 * cout * 4)
    cap = (budget_bytes // max(per_col, 1)) // 128 * 128
    cap = max(128, min(2048, hw, cap))
    for cand in range(cap, 127, -128):
        if hw % cand == 0:
            return cand
    return 128


def conv_stats_kernel(x_ref, w_ref, y_ref, sum_ref, sq_ref):
    """Phase 1: 1x1 conv (MXU) + per-channel sum / sum-of-squares accumulation.

    x_ref:   (1, Cin, T)   bf16 pixels for one batch / one HW tile
    w_ref:   (Cout, Cin)   bf16 conv weight
    y_ref:   (1, Cout, T)  f32 conv output tile (lane-dense: T is a multiple of 128)
    sum_ref: (1, Cout, 1)  f32 per-batch partial sum(y)   (accumulated over the t axis)
    sq_ref:  (1, Cout, 1)  f32 per-batch partial sum(y*y)
    """
    t = pl.program_id(1)

    x = x_ref[0]                                               # (Cin, T)
    w = w_ref[...]                                             # (Cout, Cin)
    y = jnp.dot(w, x, preferred_element_type=jnp.float32)      # (Cout, T), f32 accumulation

    y_ref[0] = y

    part_sum = jnp.sum(y, axis=-1, keepdims=True)              # (Cout, 1)
    part_sq = jnp.sum(y * y, axis=-1, keepdims=True)           # (Cout, 1)

    @pl.when(t == 0)
    def _():
        sum_ref[0] = jnp.zeros_like(part_sum)
        sq_ref[0] = jnp.zeros_like(part_sq)

    sum_ref[0] = sum_ref[0] + part_sum
    sq_ref[0] = sq_ref[0] + part_sq


def bn_relu_kernel(y_ref, scale_ref, shift_ref, o_ref):
    """Phase 2: fused BN(scale, shift) + ReLU — one FMA + one max per element."""
    y = y_ref[...]                                             # (1, Cout, T) f32
    o_ref[...] = jnp.maximum(y * scale_ref[...] + shift_ref[...], 0.0).astype(o_ref.dtype)


def conv_module_forward(x_nchw, conv_weight, gamma, beta):
    """x_nchw: (B, Cin, H, W). conv_weight: (Cout, Cin, 1, 1). Returns (B, Cout, H, W) f32."""
    B, Cin, H, W = x_nchw.shape
    Cout = conv_weight.shape[0]
    HW = H * W

    # Free reshapes only (no transposes): NCHW layout kept throughout.
    # bf16 matmul operands halve x-read traffic / tile footprint; accumulation & BN stay f32.
    x = x_nchw.reshape(B, Cin, HW).astype(jnp.bfloat16)
    w = conv_weight.reshape(Cout, Cin).astype(jnp.bfloat16)

    t_hw = _pick_tile_hw(HW, Cin, Cout)
    grid = (B, HW // t_hw)

    y, psum, psq = pl.pallas_call(
        conv_stats_kernel,
        out_shape=(
            jax.ShapeDtypeStruct((B, Cout, HW), jnp.float32),
            jax.ShapeDtypeStruct((B, Cout, 1), jnp.float32),
            jax.ShapeDtypeStruct((B, Cout, 1), jnp.float32),
        ),
        grid=grid,
        in_specs=[
            pl.BlockSpec((1, Cin, t_hw), lambda b, t: (b, 0, t)),
            pl.BlockSpec((Cout, Cin), lambda b, t: (0, 0)),
        ],
        out_specs=(
            pl.BlockSpec((1, Cout, t_hw), lambda b, t: (b, 0, t)),
            pl.BlockSpec((1, Cout, 1), lambda b, t: (b, 0, 0)),
            pl.BlockSpec((1, Cout, 1), lambda b, t: (b, 0, 0)),
        ),
        compiler_params=pltpu.CompilerParams(
            dimension_semantics=("parallel", "arbitrary"),
            vmem_limit_bytes=VMEM_LIMIT_BYTES,
        ),
        cost_estimate=pl.CostEstimate(
            flops=2 * B * HW * Cin * Cout,
            transcendentals=0,
            bytes_accessed=B * Cin * HW * 2 + B * Cout * HW * 4,
        ),
    )(x, w)

    # Tiny glue (fused by XLA under jit): combine per-batch partials into global batch
    # statistics and fold gamma/beta/mean/var into one per-channel scale & shift.
    n = jnp.float32(B * HW)
    mean = jnp.sum(psum[:, :, 0], axis=0) / n                  # (Cout,)
    var = jnp.sum(psq[:, :, 0], axis=0) / n - mean * mean      # biased var (train-mode BN), f32
    scale = gamma * jax.lax.rsqrt(var + EPS)
    shift = beta - mean * scale
    scale2 = scale.reshape(Cout, 1).astype(jnp.float32)
    shift2 = shift.reshape(Cout, 1).astype(jnp.float32)

    out = pl.pallas_call(
        bn_relu_kernel,
        out_shape=jax.ShapeDtypeStruct((B, Cout, HW), jnp.float32),
        grid=grid,
        in_specs=[
            pl.BlockSpec((1, Cout, t_hw), lambda b, t: (b, 0, t)),
            pl.BlockSpec((Cout, 1), lambda b, t: (0, 0)),
            pl.BlockSpec((Cout, 1), lambda b, t: (0, 0)),
        ],
        out_specs=pl.BlockSpec((1, Cout, t_hw), lambda b, t: (b, 0, t)),
        compiler_params=pltpu.CompilerParams(
            dimension_semantics=("parallel", "parallel"),
            vmem_limit_bytes=VMEM_LIMIT_BYTES,
        ),
        input_output_aliases={0: 0},  # apply BN+ReLU in place over the phase-1 buffer
        cost_estimate=pl.CostEstimate(
            flops=2 * B * Cout * HW,
            transcendentals=0,
            bytes_accessed=2 * B * Cout * HW * 4,
        ),
    )(y, scale2, shift2)

    # Free reshape back to NCHW.
    return out.reshape(B, Cout, H, W)


def reference_forward(x_nchw, conv_weight, gamma, beta):
    """Pure-JAX f32 reference matching the PyTorch module in training mode."""
    Cout, Cin = conv_weight.shape[0], conv_weight.shape[1]
    y = jnp.einsum("bchw,oc->bohw", x_nchw, conv_weight.reshape(Cout, Cin))
    mean = jnp.mean(y, axis=(0, 2, 3), keepdims=True)
    var = jnp.mean((y - mean) ** 2, axis=(0, 2, 3), keepdims=True)
    y_hat = (y - mean) / jnp.sqrt(var + EPS)
    out = y_hat * gamma.reshape(1, Cout, 1, 1) + beta.reshape(1, Cout, 1, 1)
    return jnp.maximum(out, 0.0)


if __name__ == "__main__":
    B, Cin, Cout, H, W = 2, 4, 8, 16, 16

    key = jax.random.PRNGKey(0)
    kx, kw = jax.random.split(key)
    x = jax.random.normal(kx, (B, Cin, H, W), dtype=jnp.float32)

    # Deterministic parameter init (Conv2d kaiming-uniform-like range; BN affine defaults).
    bound = 1.0 / jnp.sqrt(float(Cin))
    conv_weight = jax.random.uniform(
        kw, (Cout, Cin, 1, 1), minval=-bound, maxval=bound, dtype=jnp.float32
    )
    gamma = jnp.ones((Cout,), dtype=jnp.float32)
    beta = jnp.zeros((Cout,), dtype=jnp.float32)

    fwd = jax.jit(conv_module_forward)
    out = jax.block_until_ready(fwd(x, conv_weight, gamma, beta))

    ref = reference_forward(x, conv_weight, gamma, beta)
    assert out.shape == (B, Cout, H, W)
    # Tolerance relaxed vs the f32 reference because the conv matmul operands are bf16
    # (accumulation and all BN statistics remain f32).
    assert jnp.allclose(out, ref, atol=5e-2, rtol=5e-2), "mismatch vs reference"

    print("KERNEL_OK")
</pallas_src>

<mosaic_0001>
module attributes {stable_mosaic.version = 11 : i64} {
  func.func @bn_relu_kernel(%arg0: i32, %arg1: i32, %arg2: memref<1x8x256xf32, #tpu.memory_space<vmem>>, %arg3: memref<8x1xf32, #tpu.memory_space<vmem>>, %arg4: memref<8x1xf32, #tpu.memory_space<vmem>>, %arg5: memref<1x8x256xf32, #tpu.memory_space<vmem>>) attributes {dimension_semantics = [#tpu.dimension_semantics<parallel>, #tpu.dimension_semantics<parallel>], iteration_bounds = array<i64: 2, 1>, scalar_prefetch = 0 : i64, scratch_operands = 0 : i64, tpu.core_type = #tpu.core_type<tc>, window_params = [{transform_indices = @transform_0, window_bounds = array<i64: 1, 8, 256>}, {pipeline_mode = #tpu.pipeline_mode<synchronous>, transform_indices = @transform_1, window_bounds = array<i64: 8, 1>}, {pipeline_mode = #tpu.pipeline_mode<synchronous>, transform_indices = @transform_2, window_bounds = array<i64: 8, 1>}, {transform_indices = @transform_3, window_bounds = array<i64: 1, 8, 256>}]} {
    %c0 = arith.constant 0 : index
    %c0_0 = arith.constant 0 : index
    %c0_1 = arith.constant 0 : index
    %0 = vector.load %arg2[%c0, %c0_0, %c0_1] : memref<1x8x256xf32, #tpu.memory_space<vmem>>, vector<1x8x256xf32>
    %c0_2 = arith.constant 0 : index
    %c0_3 = arith.constant 0 : index
    %1 = vector.load %arg3[%c0_2, %c0_3] : memref<8x1xf32, #tpu.memory_space<vmem>>, vector<8x1xf32>
    %2 = vector.shape_cast %1 : vector<8x1xf32> to vector<1x8x1xf32>
    %3 = vector.broadcast %2 : vector<1x8x1xf32> to vector<1x8x256xf32>
    %4 = arith.mulf %0, %3 : vector<1x8x256xf32>
    %c0_4 = arith.constant 0 : index
    %c0_5 = arith.constant 0 : index
    %5 = vector.load %arg4[%c0_4, %c0_5] : memref<8x1xf32, #tpu.memory_space<vmem>>, vector<8x1xf32>
    %6 = vector.shape_cast %5 : vector<8x1xf32> to vector<1x8x1xf32>
    %7 = vector.broadcast %6 : vector<1x8x1xf32> to vector<1x8x256xf32>
    %8 = arith.addf %4, %7 : vector<1x8x256xf32>
    %cst = arith.constant 0.000000e+00 : f32
    %9 = vector.broadcast %cst : f32 to vector<1x8x256xf32>
    %10 = arith.maximumf %8, %9 : vector<1x8x256xf32>
    %c0_6 = arith.constant 0 : index
    %c0_7 = arith.constant 0 : index
    %c0_8 = arith.constant 0 : index
    %11 = vector.load %arg5[%c0_6, %c0_7, %c0_8] : memref<1x8x256xf32, #tpu.memory_space<vmem>>, vector<1x8x256xf32>
    tpu.vector_store %arg5[%c0_6, %c0_7, %c0_8], %10 {strides = array<i32>} : memref<1x8x256xf32, #tpu.memory_space<vmem>>, vector<1x8x256xf32>,
    return
  }
  func.func @transform_0(%arg0: i32, %arg1: i32) -> (i32, i32, i32) {
    %c0_i32 = arith.constant 0 : i32
    %c0_i32_0 = arith.constant 0 : i32
    return %arg0, %c0_i32, %arg1 : i32, i32, i32
  }
  func.func @transform_1(%arg0: i32, %arg1: i32) -> (i32, i32) {
    %c0_i32 = arith.constant 0 : i32
    %c0_i32_0 = arith.constant 0 : i32
    %c0_i32_1 = arith.constant 0 : i32
    return %c0_i32, %c0_i32_0 : i32, i32
  }
  func.func @transform_2(%arg0: i32, %arg1: i32) -> (i32, i32) {
    %c0_i32 = arith.constant 0 : i32
    %c0_i32_0 = arith.constant 0 : i32
    %c0_i32_1 = arith.constant 0 : i32
    return %c0_i32, %c0_i32_0 : i32, i32
  }
  func.func @transform_3(%arg0: i32, %arg1: i32) -> (i32, i32, i32) {
    %c0_i32 = arith.constant 0 : i32
    %c0_i32_0 = arith.constant 0 : i32
    return %arg0, %c0_i32, %arg1 : i32, i32, i32
  }
}

module attributes {stable_mosaic.version = 11 : i64} {
  func.func @conv_stats_kernel(%arg0: i32, %arg1: i32, %arg2: memref<1x4x256xbf16, #tpu.memory_space<vmem>>, %arg3: memref<8x4xbf16, #tpu.memory_space<vmem>>, %arg4: memref<1x8x256xf32, #tpu.memory_space<vmem>>, %arg5: memref<1x8x1xf32, #tpu.memory_space<vmem>>, %arg6: memref<1x8x1xf32, #tpu.memory_space<vmem>>) attributes {dimension_semantics = [#tpu.dimension_semantics<parallel>, #tpu.dimension_semantics<arbitrary>], iteration_bounds = array<i64: 2, 1>, scalar_prefetch = 0 : i64, scratch_operands = 0 : i64, tpu.core_type = #tpu.core_type<tc>, window_params = [{transform_indices = @transform_0, window_bounds = array<i64: 1, 4, 256>}, {pipeline_mode = #tpu.pipeline_mode<synchronous>, transform_indices = @transform_1, window_bounds = array<i64: 8, 4>}, {transform_indices = @transform_2, window_bounds = array<i64: 1, 8, 256>}, {transform_indices = @transform_3, window_bounds = array<i64: 1, 8, 1>}, {transform_indices = @transform_4, window_bounds = array<i64: 1, 8, 1>}]} {
    %c0 = arith.constant 0 : index
    %c0_0 = arith.constant 0 : index
    %c0_1 = arith.constant 0 : index
    %0 = vector.load %arg2[%c0, %c0_0, %c0_1] : memref<1x4x256xbf16, #tpu.memory_space<vmem>>, vector<1x4x256xbf16>
    %1 = vector.shape_cast %0 : vector<1x4x256xbf16> to vector<4x256xbf16>
    %c0_2 = arith.constant 0 : index
    %c0_3 = arith.constant 0 : index
    %2 = vector.load %arg3[%c0_2, %c0_3] : memref<8x4xbf16, #tpu.memory_space<vmem>>, vector<8x4xbf16>
    %cst = arith.constant dense<0.000000e+00> : vector<8x256xf32>
    %3 = tpu.matmul %2, %1, %cst {dimension_numbers = #tpu.dot_dimension_numbers<[1], [0], [0], [1], [0, 0, 1, 1], [], []>} : vector<8x4xbf16>, vector<4x256xbf16>, vector<8x256xf32> -> vector<8x256xf32>
    %c0_4 = arith.constant 0 : index
    %c0_5 = arith.constant 0 : index
    %c0_6 = arith.constant 0 : index
    %4 = vector.load %arg4[%c0_4, %c0_5, %c0_6] : memref<1x8x256xf32, #tpu.memory_space<vmem>>, vector<1x8x256xf32>
    %5 = vector.shape_cast %4 : vector<1x8x256xf32> to vector<8x256xf32>
    %6 = vector.shape_cast %3 : vector<8x256xf32> to vector<1x8x256xf32>
    tpu.vector_store %arg4[%c0_4, %c0_5, %c0_6], %6 {strides = array<i32>} : memref<1x8x256xf32, #tpu.memory_space<vmem>>, vector<1x8x256xf32>,
    %cst_7 = arith.constant dense<0.000000e+00> : vector<8xf32>
    %7 = vector.multi_reduction <add>, %3, %cst_7 [1] : vector<8x256xf32> to vector<8xf32>
    %8 = vector.shape_cast %7 : vector<8xf32> to vector<8x1xf32>
    %9 = arith.mulf %3, %3 : vector<8x256xf32>
    %cst_8 = arith.constant dense<0.000000e+00> : vector<8xf32>
    %10 = vector.multi_reduction <add>, %9, %cst_8 [1] : vector<8x256xf32> to vector<8xf32>
    %11 = vector.shape_cast %10 : vector<8xf32> to vector<8x1xf32>
    %c0_i32 = arith.constant 0 : i32
    %12 = arith.cmpi eq, %arg1, %c0_i32 : i32
    %13 = arith.extui %12 : i1 to i32
    %c0_i32_9 = arith.constant 0 : i32
    %14 = arith.cmpi ne, %13, %c0_i32_9 : i32
    scf.if %14 {
      %cst_22 = arith.constant 0.000000e+00 : f32
      %27 = vector.broadcast %cst_22 : f32 to vector<8x1xf32>
      %c0_23 = arith.constant 0 : index
      %c0_24 = arith.constant 0 : index
      %c0_25 = arith.constant 0 : index
      %28 = vector.load %arg5[%c0_23, %c0_24, %c0_25] : memref<1x8x1xf32, #tpu.memory_space<vmem>>, vector<1x8x1xf32>
      %29 = vector.shape_cast %28 : vector<1x8x1xf32> to vector<8x1xf32>
      %30 = vector.shape_cast %27 : vector<8x1xf32> to vector<1x8x1xf32>
      tpu.vector_store %arg5[%c0_23, %c0_24, %c0_25], %30 {strides = array<i32>} : memref<1x8x1xf32, #tpu.memory_space<vmem>>, vector<1x8x1xf32>,
      %cst_26 = arith.constant 0.000000e+00 : f32
      %31 = vector.broadcast %cst_26 : f32 to vector<8x1xf32>
      %c0_27 = arith.constant 0 : index
      %c0_28 = arith.constant 0 : index
      %c0_29 = arith.constant 0 : index
      %32 = vector.load %arg6[%c0_27, %c0_28, %c0_29] : memref<1x8x1xf32, #tpu.memory_space<vmem>>, vector<1x8x1xf32>
      %33 = vector.shape_cast %32 : vector<1x8x1xf32> to vector<8x1xf32>
      %34 = vector.shape_cast %31 : vector<8x1xf32> to vector<1x8x1xf32>
      tpu.vector_store %arg6[%c0_27, %c0_28, %c0_29], %34 {strides = array<i32>} : memref<1x8x1xf32, #tpu.memory_space<vmem>>, vector<1x8x1xf32>,
    } else {
    }
    %c0_10 = arith.constant 0 : index
    %c0_11 = arith.constant 0 : index
    %c0_12 = arith.constant 0 : index
    %15 = vector.load %arg5[%c0_10, %c0_11, %c0_12] : memref<1x8x1xf32, #tpu.memory_space<vmem>>, vector<1x8x1xf32>
    %16 = vector.shape_cast %15 : vector<1x8x1xf32> to vector<8x1xf32>
    %17 = arith.addf %16, %8 : vector<8x1xf32>
    %c0_13 = arith.constant 0 : index
    %c0_14 = arith.constant 0 : index
    %c0_15 = arith.constant 0 : index
    %18 = vector.load %arg5[%c0_13, %c0_14, %c0_15] : memref<1x8x1xf32, #tpu.memory_space<vmem>>, vector<1x8x1xf32>
    %19 = vector.shape_cast %18 : vector<1x8x1xf32> to vector<8x1xf32>
    %20 = vector.shape_cast %17 : vector<8x1xf32> to vector<1x8x1xf32>
    tpu.vector_store %arg5[%c0_13, %c0_14, %c0_15], %20 {strides = array<i32>} : memref<1x8x1xf32, #tpu.memory_space<vmem>>, vector<1x8x1xf32>,
    %c0_16 = arith.constant 0 : index
    %c0_17 = arith.constant 0 : index
    %c0_18 = arith.constant 0 : index
    %21 = vector.load %arg6[%c0_16, %c0_17, %c0_18] : memref<1x8x1xf32, #tpu.memory_space<vmem>>, vector<1x8x1xf32>
    %22 = vector.shape_cast %21 : vector<1x8x1xf32> to vector<8x1xf32>
    %23 = arith.addf %22, %11 : vector<8x1xf32>
    %c0_19 = arith.constant 0 : index
    %c0_20 = arith.constant 0 : index
    %c0_21 = arith.constant 0 : index
    %24 = vector.load %arg6[%c0_19, %c0_20, %c0_21] : memref<1x8x1xf32, #tpu.memory_space<vmem>>, vector<1x8x1xf32>
    %25 = vector.shape_cast %24 : vector<1x8x1xf32> to vector<8x1xf32>
    %26 = vector.shape_cast %23 : vector<8x1xf32> to vector<1x8x1xf32>
    tpu.vector_store %arg6[%c0_19, %c0_20, %c0_21], %26 {strides = array<i32>} : memref<1x8x1xf32, #tpu.memory_space<vmem>>, vector<1x8x1xf32>,
    return
  }
  func.func @transform_0(%arg0: i32, %arg1: i32) -> (i32, i32, i32) {
    %c0_i32 = arith.constant 0 : i32
    %c0_i32_0 = arith.constant 0 : i32
    return %arg0, %c0_i32, %arg1 : i32, i32, i32
  }
  func.func @transform_1(%arg0: i32, %arg1: i32) -> (i32, i32) {
    %c0_i32 = arith.constant 0 : i32
    %c0_i32_0 = arith.constant 0 : i32
    %c0_i32_1 = arith.constant 0 : i32
    return %c0_i32, %c0_i32_0 : i32, i32
  }
  func.func @transform_2(%arg0: i32, %arg1: i32) -> (i32, i32, i32) {
    %c0_i32 = arith.constant 0 : i32
    %c0_i32_0 = arith.constant 0 : i32
    return %arg0, %c0_i32, %arg1 : i32, i32, i32
  }
  func.func @transform_3(%arg0: i32, %arg1: i32) -> (i32, i32, i32) {
    %c0_i32 = arith.constant 0 : i32
    %c0_i32_0 = arith.constant 0 : i32
    %c0_i32_1 = arith.constant 0 : i32
    return %arg0, %c0_i32, %c0_i32_0 : i32, i32, i32
  }
  func.func @transform_4(%arg0: i32, %arg1: i32) -> (i32, i32, i32) {
    %c0_i32 = arith.constant 0 : i32
    %c0_i32_0 = arith.constant 0 : i32
    %c0_i32_1 = arith.constant 0 : i32
    return %arg0, %c0_i32, %c0_i32_0 : i32, i32, i32
  }
}

</mosaic_0001>

<bundles_post_ra>
// kernel: conv_module_forward.3
= control target key start
LH: loop header
LB: loop body
LE: loop exit
PB: predicated region body
PF: predicated region fallthrough
CT: control target
= control target key end

     0   :  { %s403_s12 = smov 0   ;;  %s405_s13 = smov 0   ;;  %s442_s0 = inlined_call_operand.vmem [shape: f32[2,8,256], index: 0, kind: input, shape index: {}, may-alias: {0,3}]   ;;  %s443_s1 = inlined_call_operand.vmem [shape: f32[8,1], index: 1, kind: input, shape index: {}]   ;;  %s444_s2 = inlined_call_operand.vmem [shape: f32[8,1], index: 2, kind: input, shape index: {}]   ;;  %s445_s3 = inlined_call_operand.vmem [shape: f32[2,8,256], index: 3, kind: output, shape index: {}, may-alias: {0,3}]  }
   0x1   :  { %s407_s14 = smov 0  }
   0x2 LB: > { %s25_s15 = sadd.s32 1, %s376_s13  ;;  %p323_p0 = scmp.ge.s32.totalorder %s380_s14, 1  ;;  %s380_s14 = sphi %s407_s14, %s13_s14   ;;  %s376_s13 = sphi %s405_s13, %s447_s13   ;;  %s372_s12 = sphi %s403_s12, %s446_s12  }
   0x3   : > { %p27_p1 = scmp.ge.s32.totalorder %s25_s15, 2  ;;  %p158_p2 = scmp.lt.s32.totalorder %s380_s14, 3 }
   0x5   : > { %s449_s15 = smov (%p27_p1, %s25_s15), 0  ;;  %p159_p3 = pnand %p323_p0, %p158_p2 }
   0x6   : > { %p191_p4 = scmp.lt.s32.totalorder (!%p159_p3), %s372_s12, 1 }
   0x7   : > { %162 = sbr.rel (%p159_p3) target bundleno = 143 (0x8f), region = 32 }
   0xc   : > { %v212_v0 = vld [vmem:[%s443_s1] sm:$0xff]  ;;  %v382_v1 = vmov 0   ;;  %s451_s12 = smov (!%p191_p4, %s372_s12), 1 }
   0xd   : > { %357 = vset.pattern.permute.xlu0 %v382_v1  ;;  %v220_v2 = vld [vmem:[%s444_s2] sm:$0xff]  ;;  %s330_s20 = sshll.u32 %s451_s12, 4 }
   0xe   : > { %215 = vperm.xlu0 %357, %v212_v0   ;;  %s198_s23 = scalar_lea.vmem %s442_s0, %s330_s20  ;;  %s208_s26 = scalar_lea.vmem %s445_s3, %s330_s20 }
   0xf   : > { %v210_v4 = vld [vmem:[%s198_s23] sm:$0xff]  ;;  %v211_v5 = vld [vmem:[%s198_s23 + $0x8] sm:$0xff] }
  0x16   : > { %223 = vperm.xlu0 %357, %v220_v2  }
  0x80   : > { %v216_v3 = vpop.permute.xlu0 %215 }
  0x81   : > { %v218_v6 = vmul.f32 %v216_v3, %v210_v4  ;;  %v219_v7 = vmul.f32 %v216_v3, %v211_v5 }
  0x88   : > { %v224_v8 = vpop.permute.xlu0 %223 }
  0x89   : > { %v226_v9 = vadd.f32 %v224_v8, %v218_v6  ;;  %v227_v10 = vadd.f32 %v224_v8, %v219_v7 }
  0x8b   : > { %v228_v11 = vmax.f32 %v226_v9, 0.0  ;;  %v229_v12 = vmax.f32 %v227_v10, 0.0 }
  0x8d   : > { %230 = vst [vmem:[%s208_s26] sm:$0xff] %v228_v11 }
  0x8e   : > { %231 = vst [vmem:[%s208_s26 + $0x8] sm:$0xff] %v229_v12 }
  0x8f PF: > { %s13_s14 = sadd.s32 1, %s380_s14   ;;  %s446_s12 = smov %s376_s13 }
  0x90   : > { %p10_p5 = scmp.ge.s32.totalorder %s13_s14, 4   ;;  %s447_s13 = smov %s449_s15 }
  0x92   :  { %12 = sbr.rel (!%p10_p5) target bundleno = 2 (0x2), region = 62 }

// kernel: conv_module_forward.2
= control target key start
LH: loop header
LB: loop body
LE: loop exit
PB: predicated region body
PF: predicated region fallthrough
CT: control target
= control target key end

     0   :  { %s565_s15 = smov 0   ;;  %s567_s16 = smov 0   ;;  %s611_s0 = inlined_call_operand.vmem [shape: bf16[2,4,256], index: 0, kind: input, shape index: {}]   ;;  %s612_s1 = inlined_call_operand.vmem [shape: bf16[8,4], index: 1, kind: input, shape index: {}]   ;;  %s613_s2 = inlined_call_operand.vmem [shape: f32[2,8,256], index: 2, kind: output, shape index: {0}]   ;;  %s614_s3 = inlined_call_operand.vmem [shape: f32[2,8,1], index: 3, kind: output, shape index: {1}]   ;;  %s615_s4 = inlined_call_operand.vmem [shape: f32[2,8,1], index: 4, kind: output, shape index: {2}]  }
   0x1   :  { %s569_s17 = smov 0  }
   0x2 LB: > { %s27_s18 = sadd.s32 1, %s533_s16  ;;  %p477_p0 = scmp.ge.s32.totalorder %s537_s17, 1  ;;  %s537_s17 = sphi %s569_s17, %s15_s17   ;;  %s533_s16 = sphi %s567_s16, %s617_s16   ;;  %s529_s15 = sphi %s565_s15, %s616_s15  }
   0x3   : > { %p29_p1 = scmp.ge.s32.totalorder %s27_s18, 2  ;;  %p188_p2 = scmp.lt.s32.totalorder %s537_s17, 3 }
   0x5   : > { %s619_s18 = smov (%p29_p1, %s27_s18), 0  ;;  %p189_p3 = pnand %p477_p0, %p188_p2 }
   0x6   : > { %p231_p4 = scmp.lt.s32.totalorder (!%p189_p3), %s529_s15, 1 }
   0x7   : > { %192 = sbr.rel (%p189_p3) target bundleno = 283 (0x11b), region = 28 }
   0xc   : > { %s621_s15 = smov (!%p231_p4, %s529_s15), 1  ;;  %vm269_vm0 = vcmask 1041408   ;;  %v260_v5 = vld [vmem:[%s612_s1] sm:$0xf]  ;;  %vm265_vm1 = vcmask 31744   ;;  %vm314_vm2 = vcmask 7168  }
   0xd   : > { %s488_s19 = sshll.u32 %s621_s15, 2  ;;  %s482_s25 = sshll.u32 %s621_s15, 3  ;;  %v539_v6 = vmov 0.0  }
   0xe   : > { %s238_s22 = scalar_lea.vmem %s611_s0, %s488_s19  ;;  %s253_s28 = scalar_lea.vmem %s614_s3, %s482_s25 }
   0xf   : > { %v259_v0 = vld [vmem:[%s238_s22] sm:$0xf]  ;;  %315 = vst.msk [vmem:[%s253_s28] sm:$0xff] %vm314_vm2, %v539_v6  ;;  %s257_s5 = scalar_lea.vmem %s615_s4, %s482_s25  ;;  %s489_s6 = sshll.u32 %s621_s15, 4 }
  0x10   : > { %262 = vst [vmem:[#allocation1] ss:$4 sm:$0xff] %v259_v0  ;;  %s248_s9 = scalar_lea.vmem %s613_s2, %s489_s6 }
  0x11   : > { %316 = vst.msk [vmem:[%s257_s5] sm:$0xff] %vm314_vm2, %v539_v6 }
  0x16   : > { %v317_v15 = vld [vmem:[%s253_s28] sm:$0xff] }
  0x17   : > { %v263_v1 = vld.sshfl [vmem:[#allocation1] sm:$0xff pattern:$0x73625140]  ;;  %v264_v2 = vld.sshfl [vmem:[#allocation1 + $0x8] sm:$0xff pattern:$0x73625140] }
  0x18   : > { %v270_v3 = vsel %vm269_vm0, %v263_v1, 0  ;;  %v272_v4 = vsel %vm269_vm0, %v264_v2, 0  ;;  %v321_v18 = vld [vmem:[%s257_s5] sm:$0xff] }
  0x19   : > { %281 = vmatpush.bf16.msra.mxu0 %v270_v3  ;;  %294 = vmatpush.bf16.msra.mxu1 %v272_v4 }
  0x1c   : > { %484 = vmatmul.msk.bf16.vlgmr.msra.gmra.mxu0 %vm265_vm1, %v260_v5  ;;  %485 = vmatmul.msk.bf16.vlgmr.msra.gmra.mxu1 %vm265_vm1, %v260_v5 }
  0x99   : > { %v283_v7 = vpop.f32.mrf.mxu0  ;;  %v296_v8 = vpop.f32.mrf.mxu1 }
  0x9a   : > { %300 = vst [vmem:[%s248_s9] sm:$0xff] %v283_v7  ;;  %v302_v9 = vadd.f32 %v296_v8, %v283_v7  ;;  %v305_v10 = vmul.f32 %v283_v7, %v283_v7  ;;  %v306_v11 = vmul.f32 %v296_v8, %v296_v8 }
  0x9b   : > { %301 = vst [vmem:[%s248_s9 + $0x8] sm:$0xff] %v296_v8 }
  0x9c   : > { %303 = vadd.xlane.f32.xlu0 %v302_v9  ;;  %v307_v14 = vadd.f32 %v306_v11, %v305_v10 }
  0xa1   : > { %v285_v12 = vpop.f32.mrf.mxu0  ;;  %v298_v13 = vpop.f32.mrf.mxu1 }
  0xa4   : > { %308 = vadd.xlane.f32.xlu0 %v307_v14 }
 0x10f   : > { %v304_v16 = vpop.xlane.xlu0 %303 }
 0x110   : > { %v318_v17 = vadd.f32 %v317_v15, %v304_v16 }
 0x112   : > { %320 = vst.msk [vmem:[%s253_s28] sm:$0xff] %vm314_vm2, %v318_v17 }
 0x117   : > { %v309_v19 = vpop.xlane.xlu0 %308 }
 0x118   : > { %v322_v20 = vadd.f32 %v321_v18, %v309_v19 }
 0x11a   : > { %323 = vst.msk [vmem:[%s257_s5] sm:$0xff] %vm314_vm2, %v322_v20 }
 0x11b PF: > { %s15_s17 = sadd.s32 1, %s537_s17   ;;  %s616_s15 = smov %s533_s16 }
 0x11c   : > { %p12_p5 = scmp.ge.s32.totalorder %s15_s17, 4   ;;  %s617_s16 = smov %s619_s18 }
 0x11e   :  { %14 = sbr.rel (!%p12_p5) target bundleno = 2 (0x2), region = 86 }

</bundles_post_ra>
